<compile_context>
chip_gen: v6e
topology: v6e:2x2x1
jax: 0.10.0
libtpu: 0.0.40
codegen_flags: <defaults>
</compile_context>

<pallas_src>
import functools

import jax
import jax.numpy as jnp
from jax import lax
from jax.experimental import pallas as pl
from jax.experimental.pallas import tpu as pltpu

_LANES = 128
_SUBLANES = 8
_MAX_TILE_ROWS = 1024  # 1024 rows * 128 lanes: 2 MiB f32 inputs/step, x2 buffered.


def _cqr_loss_kernel(yp_ref, yt_ref, acc_ref, *, al, ah, n_valid, apply_mask):
    """yp_ref: (3, TR, 128) [p_l, p_m, p_h]; yt_ref: (TR, 128); acc_ref: (8, 128)."""

    @pl.when(pl.program_id(0) == 0)
    def _():
        acc_ref[...] = jnp.zeros_like(acc_ref)

    # Widen to f32 inside the kernel (inputs may be bf16 to halve HBM traffic).
    p_l = yp_ref[0].astype(jnp.float32)
    p_m = yp_ref[1].astype(jnp.float32)
    p_h = yp_ref[2].astype(jnp.float32)
    y_t = yt_ref[...].astype(jnp.float32)

    d_l = y_t - p_l
    d_h = y_t - p_h
    d_m = p_m - y_t

    # Pinball loss as max(a*d, (a-1)*d); median term is plain MSE.
    loss = (jnp.maximum(al * d_l, (al - 1.0) * d_l)
            + jnp.maximum(ah * d_h, (ah - 1.0) * d_h)
            + d_m * d_m)                                   # (TR, 128)

    tr = loss.shape[0]

    if apply_mask:
        # Grid does not exactly cover the (S, 128) slab -> the trailing rows of
        # the last block hold undefined VMEM contents; mask by global index.
        base = pl.program_id(0) * (tr * _LANES)
        row = lax.broadcasted_iota(jnp.int32, (tr, _LANES), 0)
        lane = lax.broadcasted_iota(jnp.int32, (tr, _LANES), 1)
        idx = base + row * _LANES + lane
        loss = jnp.where(idx < n_valid, loss, 0.0)

    # Partial-reduce to one (8, 128) vreg with pure VPU adds (no per-tile XLU
    # reduction); the tiny cross-lane reduce happens once in the wrapper.
    partial = loss.reshape(tr // _SUBLANES, _SUBLANES, _LANES).sum(axis=0)
    acc_ref[...] += partial


def cqr_loss(y_pred, y_true, loss_alpha=0.1, max_tile_rows=_MAX_TILE_ROWS):
    """y_pred: (N, 3), y_true: (N,) -> scalar float32 (same math as CQRLoss)."""
    assert y_pred.ndim == 2 and y_pred.shape[1] == 3, "The input dims must be 3!"
    assert max_tile_rows % 16 == 0
    n = y_pred.shape[0]
    al = loss_alpha / 2.0
    ah = 1.0 - loss_alpha / 2.0

    # Lane-dense layout: S rows of 128 lanes, tiled over a single grid axis.
    s_rows = -(-n // _LANES)
    tile_rows = min(max_tile_rows, ((s_rows + 15) // 16) * 16)  # mult of 16 (bf16 ok)
    num_tiles = -(-s_rows // tile_rows)
    apply_mask = (num_tiles * tile_rows) != s_rows  # partial last block present
    n_slab = s_rows * _LANES

    # y_pred: unavoidable transpose (+ tail pad, fused into the same copy).
    # y_true: pad-free reshape when N % 128 == 0, else one small pad copy.
    yp_t = y_pred.T                      # (3, N), dtype preserved (f32 or bf16)
    yt = y_true
    if n_slab != n:
        yp_t = jnp.pad(yp_t, ((0, 0), (0, n_slab - n)))
        yt = jnp.pad(yt, (0, n_slab - n))
    yp_slab = yp_t.reshape(3, s_rows, _LANES)
    yt_slab = yt.reshape(s_rows, _LANES)

    kernel = functools.partial(_cqr_loss_kernel, al=al, ah=ah,
                               n_valid=n, apply_mask=apply_mask)

    bytes_in = (3 * n_slab * jnp.dtype(yp_slab.dtype).itemsize
                + n_slab * jnp.dtype(yt_slab.dtype).itemsize)

    partials = pl.pallas_call(
        kernel,
        out_shape=jax.ShapeDtypeStruct((_SUBLANES, _LANES), jnp.float32),
        grid=(num_tiles,),
        in_specs=[
            pl.BlockSpec((3, tile_rows, _LANES), lambda i: (0, i, 0)),
            pl.BlockSpec((tile_rows, _LANES), lambda i: (i, 0)),
        ],
        out_specs=pl.BlockSpec((_SUBLANES, _LANES), lambda i: (0, 0)),
        compiler_params=pltpu.CompilerParams(
            dimension_semantics=("arbitrary",)),
        cost_estimate=pl.CostEstimate(
            flops=14 * n_slab,
            transcendentals=0,
            bytes_accessed=bytes_in + _SUBLANES * _LANES * 4),
    )(yp_slab, yt_slab)

    # Tiny (8, 128) reduce + the single 1/N scale (each of the three terms is
    # a mean over N, so the combined sum is divided by N once).
    return jnp.sum(partials) * (1.0 / n)


def cqr_loss_ref(y_pred, y_true, loss_alpha=0.1):
    al = loss_alpha / 2.0
    ah = 1.0 - loss_alpha / 2.0
    p_l, p_m, p_h = y_pred[:, 0], y_pred[:, 1], y_pred[:, 2]
    loss_l = jnp.mean(jnp.where(y_true > p_l, al * (y_true - p_l),
                                (1 - al) * (p_l - y_true)))
    loss_m = jnp.mean((p_m - y_true) ** 2)
    loss_h = jnp.mean(jnp.where(y_true > p_h, ah * (y_true - p_h),
                                (1 - ah) * (p_h - y_true)))
    return loss_l + loss_m + loss_h


if __name__ == "__main__":
    key = jax.random.PRNGKey(0)

    # 1) Tiny N: single tile, masked tail, padded slabs.
    k1, k2, key = jax.random.split(key, 3)
    n1 = 8
    yp1 = jax.random.normal(k1, (n1, 3), dtype=jnp.float32)
    yt1 = jax.random.normal(k2, (n1,), dtype=jnp.float32)
    out1 = jax.block_until_ready(cqr_loss(yp1, yt1))
    ref1 = cqr_loss_ref(yp1, yt1)
    assert jnp.allclose(out1, ref1, atol=1e-5, rtol=1e-5), (out1, ref1)

    # 2) Non-trivial padding / masking (N not a multiple of 128).
    k1, k2, key = jax.random.split(key, 3)
    n2 = 300
    yp2 = jax.random.normal(k1, (n2, 3), dtype=jnp.float32)
    yt2 = jax.random.normal(k2, (n2,), dtype=jnp.float32)
    out2 = jax.block_until_ready(cqr_loss(yp2, yt2))
    ref2 = cqr_loss_ref(yp2, yt2)
    assert jnp.allclose(out2, ref2, atol=1e-5, rtol=1e-5), (out2, ref2)

    # 3) Pad-free / mask-free fast path (N % 128 == 0), also exercised in bf16.
    k1, k2, key = jax.random.split(key, 3)
    n3 = 2048
    yp3 = jax.random.normal(k1, (n3, 3), dtype=jnp.float32)
    yt3 = jax.random.normal(k2, (n3,), dtype=jnp.float32)
    out3 = jax.block_until_ready(cqr_loss(yp3, yt3))
    ref3 = cqr_loss_ref(yp3, yt3)
    assert jnp.allclose(out3, ref3, atol=1e-5, rtol=1e-5), (out3, ref3)

    yp3b = yp3.astype(jnp.bfloat16)
    yt3b = yt3.astype(jnp.bfloat16)
    out3b = jax.block_until_ready(cqr_loss(yp3b, yt3b))
    ref3b = cqr_loss_ref(yp3b.astype(jnp.float32), yt3b.astype(jnp.float32))
    assert jnp.allclose(out3b, ref3b, atol=1e-4, rtol=1e-4), (out3b, ref3b)

    # 4) Multi-tile grid / resident accumulator path (small tiles forced).
    k1, k2, key = jax.random.split(key, 3)
    n4 = 5000
    yp4 = jax.random.normal(k1, (n4, 3), dtype=jnp.float32)
    yt4 = jax.random.normal(k2, (n4,), dtype=jnp.float32)
    out4 = jax.block_until_ready(cqr_loss(yp4, yt4, max_tile_rows=16))
    ref4 = cqr_loss_ref(yp4, yt4)
    assert jnp.allclose(out4, ref4, atol=1e-5, rtol=1e-5), (out4, ref4)

    print("KERNEL_OK")
</pallas_src>

<mosaic_0001>
module attributes {stable_mosaic.version = 11 : i64} {
  func.func @_cqr_loss_kernel(%arg0: i32, %arg1: memref<3x16x128xf32, #tpu.memory_space<vmem>>, %arg2: memref<16x128xf32, #tpu.memory_space<vmem>>, %arg3: memref<8x128xf32, #tpu.memory_space<vmem>>) attributes {dimension_semantics = [#tpu.dimension_semantics<arbitrary>], iteration_bounds = array<i64: 1>, scalar_prefetch = 0 : i64, scratch_operands = 0 : i64, tpu.core_type = #tpu.core_type<tc>, window_params = [{transform_indices = @transform_0, window_bounds = array<i64: 3, 16, 128>}, {transform_indices = @transform_1, window_bounds = array<i64: 16, 128>}, {pipeline_mode = #tpu.pipeline_mode<synchronous>, transform_indices = @transform_2, window_bounds = array<i64: 8, 128>}]} {
    %c0_i32 = arith.constant 0 : i32
    %0 = arith.cmpi eq, %arg0, %c0_i32 : i32
    %1 = arith.extui %0 : i1 to i32
    %c0_i32_0 = arith.constant 0 : i32
    %2 = arith.cmpi ne, %1, %c0_i32_0 : i32
    scf.if %2 {
      %cst_18 = arith.constant 0.000000e+00 : f32
      %43 = vector.broadcast %cst_18 : f32 to vector<8x128xf32>
      %c0_19 = arith.constant 0 : index
      %c0_20 = arith.constant 0 : index
      %44 = vector.load %arg3[%c0_19, %c0_20] : memref<8x128xf32, #tpu.memory_space<vmem>>, vector<8x128xf32>
      tpu.vector_store %arg3[%c0_19, %c0_20], %43 {strides = array<i32>} : memref<8x128xf32, #tpu.memory_space<vmem>>, vector<8x128xf32>,
    } else {
    }
    %c0 = arith.constant 0 : index
    %c0_1 = arith.constant 0 : index
    %c0_2 = arith.constant 0 : index
    %3 = vector.load %arg1[%c0, %c0_1, %c0_2] : memref<3x16x128xf32, #tpu.memory_space<vmem>>, vector<1x16x128xf32>
    %4 = vector.shape_cast %3 : vector<1x16x128xf32> to vector<16x128xf32>
    %c1 = arith.constant 1 : index
    %c0_3 = arith.constant 0 : index
    %c0_4 = arith.constant 0 : index
    %5 = vector.load %arg1[%c1, %c0_3, %c0_4] : memref<3x16x128xf32, #tpu.memory_space<vmem>>, vector<1x16x128xf32>
    %6 = vector.shape_cast %5 : vector<1x16x128xf32> to vector<16x128xf32>
    %c2 = arith.constant 2 : index
    %c0_5 = arith.constant 0 : index
    %c0_6 = arith.constant 0 : index
    %7 = vector.load %arg1[%c2, %c0_5, %c0_6] : memref<3x16x128xf32, #tpu.memory_space<vmem>>, vector<1x16x128xf32>
    %8 = vector.shape_cast %7 : vector<1x16x128xf32> to vector<16x128xf32>
    %c0_7 = arith.constant 0 : index
    %c0_8 = arith.constant 0 : index
    %9 = vector.load %arg2[%c0_7, %c0_8] : memref<16x128xf32, #tpu.memory_space<vmem>>, vector<16x128xf32>
    %10 = arith.subf %9, %4 : vector<16x128xf32>
    %11 = arith.subf %9, %8 : vector<16x128xf32>
    %12 = arith.subf %6, %9 : vector<16x128xf32>
    %cst = arith.constant 5.000000e-02 : f32
    %13 = vector.broadcast %cst : f32 to vector<16x128xf32>
    %14 = arith.mulf %13, %10 : vector<16x128xf32>
    %cst_9 = arith.constant -0.949999988 : f32
    %15 = vector.broadcast %cst_9 : f32 to vector<16x128xf32>
    %16 = arith.mulf %15, %10 : vector<16x128xf32>
    %17 = arith.maximumf %14, %16 : vector<16x128xf32>
    %cst_10 = arith.constant 0.949999988 : f32
    %18 = vector.broadcast %cst_10 : f32 to vector<16x128xf32>
    %19 = arith.mulf %18, %11 : vector<16x128xf32>
    %cst_11 = arith.constant -5.000000e-02 : f32
    %20 = vector.broadcast %cst_11 : f32 to vector<16x128xf32>
    %21 = arith.mulf %20, %11 : vector<16x128xf32>
    %22 = arith.maximumf %19, %21 : vector<16x128xf32>
    %23 = arith.addf %17, %22 : vector<16x128xf32>
    %24 = arith.mulf %12, %12 : vector<16x128xf32>
    %25 = arith.addf %23, %24 : vector<16x128xf32>
    %c2048_i32 = arith.constant 2048 : i32
    %26 = arith.muli %arg0, %c2048_i32 : i32
    %27 = tpu.iota {dimensions = array<i32: 0>} : vector<16x128xi32>
    %28 = tpu.iota {dimensions = array<i32: 1>} : vector<16x128xi32>
    %c128_i32 = arith.constant 128 : i32
    %29 = vector.broadcast %c128_i32 : i32 to vector<16x128xi32>
    %30 = arith.muli %27, %29 : vector<16x128xi32>
    %31 = vector.broadcast %26 : i32 to vector<16x128xi32>
    %32 = arith.addi %31, %30 : vector<16x128xi32>
    %33 = arith.addi %32, %28 : vector<16x128xi32>
    %c8_i32 = arith.constant 8 : i32
    %34 = vector.broadcast %c8_i32 : i32 to vector<16x128xi32>
    %35 = arith.cmpi slt, %33, %34 : vector<16x128xi32>
    %cst_12 = arith.constant 0.000000e+00 : f32
    %36 = vector.broadcast %cst_12 : f32 to vector<16x128xf32>
    %37 = arith.select %35, %25, %36 : vector<16x128xi1>, vector<16x128xf32>
    %38 = vector.shape_cast %37 : vector<16x128xf32> to vector<2x8x128xf32>
    %cst_13 = arith.constant dense<0.000000e+00> : vector<8x128xf32>
    %39 = vector.multi_reduction <add>, %38, %cst_13 [0] : vector<2x8x128xf32> to vector<8x128xf32>
    %c0_14 = arith.constant 0 : index
    %c0_15 = arith.constant 0 : index
    %40 = vector.load %arg3[%c0_14, %c0_15] : memref<8x128xf32, #tpu.memory_space<vmem>>, vector<8x128xf32>
    %41 = arith.addf %40, %39 : vector<8x128xf32>
    %c0_16 = arith.constant 0 : index
    %c0_17 = arith.constant 0 : index
    %42 = vector.load %arg3[%c0_16, %c0_17] : memref<8x128xf32, #tpu.memory_space<vmem>>, vector<8x128xf32>
    tpu.vector_store %arg3[%c0_16, %c0_17], %41 {strides = array<i32>} : memref<8x128xf32, #tpu.memory_space<vmem>>, vector<8x128xf32>,
    return
  }
  func.func @transform_0(%arg0: i32) -> (i32, i32, i32) {
    %c0_i32 = arith.constant 0 : i32
    %c0_i32_0 = arith.constant 0 : i32
    %c0_i32_1 = arith.constant 0 : i32
    return %c0_i32, %arg0, %c0_i32_0 : i32, i32, i32
  }
  func.func @transform_1(%arg0: i32) -> (i32, i32) {
    %c0_i32 = arith.constant 0 : i32
    %c0_i32_0 = arith.constant 0 : i32
    return %arg0, %c0_i32 : i32, i32
  }
  func.func @transform_2(%arg0: i32) -> (i32, i32) {
    %c0_i32 = arith.constant 0 : i32
    %c0_i32_0 = arith.constant 0 : i32
    %c0_i32_1 = arith.constant 0 : i32
    return %c0_i32, %c0_i32_0 : i32, i32
  }
}

</mosaic_0001>

<bundles_post_ra>
// kernel: tpu_custom_call.1
= control target key start
LH: loop header
LB: loop body
LE: loop exit
PB: predicated region body
PF: predicated region fallthrough
CT: control target
= control target key end

     0   :  { %7 = vsyncpa [#allocation3], 0  ;;  %s194_s0 = inlined_call_operand.hbm [shape: f32[3,1,128], index: 0, kind: input, shape index: {}]   ;;  %s195_s1 = inlined_call_operand.vmem [shape: f32[1,128], index: 1, kind: input, shape index: {}]   ;;  %s196_s2 = inlined_call_operand.hbm [shape: f32[8,128], index: 2, kind: output, shape index: {}]  }
   0x1   :  { %8 = vsyncpa [#allocation4], 0 }
   0x2   :  { %13 = vsyncadd [#allocation3], 720  ;;  %s18_s9 = sld [smem:[#allocation0]]   ;;  %s160_s10 = smov [#allocation2]  }
   0x3   :  { %s26_s11 = sshll.u32 %s160_s10, 4  ;;  %s161_s12 = smov 16   ;;  %s27_s11 = int_to_ptr.vmem [resolvable:$true] %s26_s11 }
   0x4   :  { %33 = sst [smem:[#allocation7]] %s161_s12  ;;  %s162_s13 = smov 256  }
   0x5   :  { %35 = sst [smem:[#allocation7 + $0x1]] %s162_s13  ;;  %s163_s14 = smov 1  }
   0x6   :  { %37 = sst [smem:[#allocation7 + $0x2]] %s163_s14  ;;  %s164_s17 = smov [#allocation3]  }
   0x7   :  { %39 = sst [smem:[#allocation7 + $0x3]] %s161_s12  ;;  %s165_s18 = smov 131072  }
   0x8   :  { %s126_s15 = sshll.u32 %s18_s9, 26  ;;  %41 = sst [smem:[#allocation7 + $0x4]] %s161_s12 }
   0x9   :  { %s127_s16 = sadd.s32 134217728, %s126_s15  ;;  %43 = sst [smem:[#allocation7 + $0x5]] %s163_s14 }
   0xa   :  { %45 = dma.general %s194_s0, 48, %s27_s11, %s164_s17, %s165_s18, [#allocation7], %s127_s16, 0  }
   0xb   :  { %156 = dma.done.wait [#allocation3], 768  }
   0xc   :  { %157 = vsyncadd [#allocation3], 4294966528  ;;  %v91_v0 = vlaneseq  ;;  %v56_v2 = vld [vmem:[#allocation2] sm:$0xff]  ;;  %v57_v3 = vld [vmem:[#allocation2 + $0x8] sm:$0xff]  ;;  %s166_s0 = smov [#allocation5]  }
   0xd   :  { %v59_v5 = vld [vmem:[#allocation2 + $0x10] sm:$0xff]  ;;  %v62_v6 = vld [vmem:[#allocation2 + $0x20] sm:$0xff]  ;;  %v63_v7 = vld [vmem:[#allocation2 + $0x28] sm:$0xff] }
   0xe   :  { %v92_v1 = vshrl.u32 %v91_v0, 7  ;;  %v60_v8 = vld [vmem:[#allocation2 + $0x18] sm:$0xff]  ;;  %v64_v9 = vld [vmem:[%s195_s1] sm:$0xff]  ;;  %v65_v10 = vld [vmem:[%s195_s1 + $0x8] sm:$0xff]  ;;  %v95_v16 = vand.u32 127, %v91_v0  ;;  %s117_s1 = sshll.u32 %s166_s0, 4  ;;  %s118_s1 = int_to_ptr.vmem [resolvable:$true] %s117_s1 }
   0xf   :  { %v66_v11 = vsub.f32 %v64_v9, %v56_v2  ;;  %v67_v12 = vsub.f32 %v65_v10, %v57_v3  ;;  %v68_v13 = vsub.f32 %v64_v9, %v62_v6  ;;  %v69_v14 = vsub.f32 %v65_v10, %v63_v7  ;;  %s136_s25 = scalar_lea.vmem %s118_s1, 128  ;;  %p141_p1 = scmp.lt.s32.totalorder %s118_s1, %s118_s1 }
  0x10   :  { %v93_v4 = vadd.s32 8, %v92_v1  ;;  %v70_v15 = vsub.f32 %v59_v5, %v64_v9  ;;  %v96_v17 = vmul.u32 128, %v92_v1  ;;  %v71_v19 = vsub.f32 %v60_v8, %v65_v10  ;;  %p137_p0 = scmp.ne.s32.totalorder %s118_s1, %s136_s25  ;;  %p142_p2 = scmp.lt.s32.totalorder %s136_s25, %s136_s25 }
  0x11   :  { %v72_v20 = vmul.f32 0.05, %v66_v11  ;;  %v73_v21 = vmul.f32 0.05, %v67_v12  ;;  %v74_v22 = vmul.f32 -0.95, %v66_v11 }
  0x12   :  { %v97_v18 = vmul.u32 128, %v93_v4  ;;  %v75_v23 = vmul.f32 -0.95, %v67_v12  ;;  %v78_v24 = vmul.f32 0.95, %v68_v13  ;;  %v101_v30 = vadd.s32 %v96_v17, %v95_v16  ;;  %p143_p3 = por %p142_p2, %p141_p1 }
  0x13   :  { %v79_v25 = vmul.f32 0.95, %v69_v14  ;;  %v76_v26 = vmax.f32 %v72_v20, %v74_v22  ;;  %v80_v27 = vmul.f32 -0.05, %v68_v13  ;;  %v81_v28 = vmul.f32 -0.05, %v69_v14 }
  0x14   :  { %v77_v29 = vmax.f32 %v73_v21, %v75_v23  ;;  %v102_v31 = vadd.s32 %v97_v18, %v95_v16  ;;  %v86_v34 = vmul.f32 %v70_v15, %v70_v15  ;;  %v87_v35 = vmul.f32 %v71_v19, %v71_v19  ;;  %p144_p4 = pnand %p143_p3, %p137_p0 }
  0x15   :  { %v82_v32 = vmax.f32 %v78_v24, %v80_v27  ;;  %v83_v33 = vmax.f32 %v79_v25, %v81_v28  ;;  %vm103_vm0 = vcmp.lt.s32.totalorder %v101_v30, 8 }
  0x16   :  { %vm104_vm1 = vcmp.lt.s32.totalorder %v102_v31, 8 }
  0x17   :  { %v84_v36 = vadd.f32 %v82_v32, %v76_v26  ;;  %v85_v37 = vadd.f32 %v83_v33, %v77_v29 }
  0x19   :  { %v88_v38 = vadd.f32 %v86_v34, %v84_v36  ;;  %v89_v39 = vadd.f32 %v87_v35, %v85_v37 }
  0x1b   :  { %v105_v40 = vsel %vm103_vm0, %v88_v38, 0.0  ;;  %v106_v41 = vsel %vm104_vm1, %v89_v39, 0.0 }
  0x1c   :  { %v107_v42 = vadd.f32 %v106_v41, %v105_v40 }
  0x1e   :  { %110 = vst [vmem:[#allocation5] sm:$0xff] %v107_v42 }
  0x1f   :  { %147 = shalt.err (!%p144_p4)
}
  0x20   :  { %120 = dma.vmem_to_hbm [thread:$0]  %s118_s1, 128, %s196_s2, [#allocation4]  }
  0x21   :  { %158 = dma.done.wait [#allocation4], 128  }
  0x22   :  { %159 = vsyncadd [#allocation4], 4294967168 }
  0x23   :  { %124 = vsyncpa [#allocation3], 1 }
  0x24   :  { %125 = vsyncpa [#allocation4], 1 }

</bundles_post_ra>
